<compile_context>
chip_gen: v5e
topology: v5e:2x2
jax: 0.10.0
libtpu: 0.0.40
codegen_flags: <defaults>
</compile_context>

<pallas_src>
from functools import partial
from typing import NamedTuple

import numpy as np
import jax
import jax.numpy as jnp
from jax.experimental import pallas as pl
from jax.experimental.pallas import tpu as pltpu


# ----------------------------------------------------------------------------
# One-time parameter preparation (NOT on the hot path)
# ----------------------------------------------------------------------------

def _round_up(x, m):
    return (x + m - 1) // m * m


def conv1d_out_len(L, k, s, p):
    return (L + 2 * p - k) // s + 1


def conv1d_toeplitz(w, L_in, stride, padding):
    """Build T s.t. (x_flat @ T)[b, co*L_out + o] == Conv1d(x, w)[b, co, o].

    x_flat is the channel-major flattening of x: x_flat[b, ci*L_in + p] = x[b, ci, p].
    Pure numpy — built once in prepare_actor_params.
    """
    w = np.asarray(w, dtype=np.float32)
    C_out, C_in, K = w.shape
    L_out = conv1d_out_len(L_in, K, stride, padding)
    T = np.zeros((C_in * L_in, C_out * L_out), dtype=np.float32)
    rows_base = np.arange(C_in) * L_in
    cols_base = np.arange(C_out) * L_out
    for o in range(L_out):
        for t in range(K):
            p = o * stride + t - padding
            if 0 <= p < L_in:
                T[(rows_base + p)[:, None], (cols_base + o)[None, :]] += w[:, :, t].T
    return T, L_out


class ActorMeta(NamedTuple):
    lidar_dim: int
    lidar_pad: int       # lidar_dim rounded up to 128 lanes
    l1: int              # conv1 output length
    l2: int              # conv2 output length
    non_lidar_dim: int
    non_lidar_pad: int   # non_lidar_dim rounded up to 16 (bf16 sublane tile)
    hidden: int          # 64
    action_dim: int


def prepare_actor_params(params, lidar_dim, non_lidar_dim,
                         compute_dtype=jnp.bfloat16):
    """One-time prep: Toeplitz matrices + packed weight/bias slabs on device."""
    H = 64
    action_dim = int(np.asarray(params['w_fc3']).shape[0])

    T1, L1 = conv1d_toeplitz(params['w_cv1'], lidar_dim, stride=2, padding=6)
    T2, L2 = conv1d_toeplitz(params['w_cv2'], L1, stride=2, padding=1)
    c1w, conv_out = 32 * L1, 32 * L2

    Lp = _round_up(lidar_dim, 128)           # lane-align the lidar slab
    NLp = _round_up(non_lidar_dim, 16)       # sublane-align (bf16 tile = 16)

    # conv1 Toeplitz padded with zero rows so the lidar slab can be 128-aligned.
    T1p = np.zeros((Lp, c1w), np.float32)
    T1p[:lidar_dim] = T1

    # --- packed FC weight slab: rows = [fc1 | fc2_a | fc2_b(pad) | fc3(pad)] ---
    w_fc1 = np.asarray(params['w_fc1'], np.float32).T            # (conv_out, 64)
    w_fc2 = np.asarray(params['w_fc2'], np.float32)              # (64, 64+NL)
    w2a = w_fc2[:, :H].T                                         # (64, 64)
    w2b = np.zeros((NLp, H), np.float32)
    w2b[:non_lidar_dim] = w_fc2[:, H:].T                         # (NL, 64) padded
    w3 = np.zeros((H, H), np.float32)
    w3[:, :action_dim] = np.asarray(params['w_fc3'], np.float32).T  # (64, A) padded
    w_slab = np.concatenate([w_fc1, w2a, w2b, w3], axis=0)       # (conv_out+2H+NLp, 64)

    # --- packed bias slab (f32, one row per layer) ---
    BW = max(c1w, conv_out, H)
    b_slab = np.zeros((8, BW), np.float32)
    b_slab[0, :c1w] = np.repeat(np.asarray(params['b_cv1'], np.float32), L1)
    b_slab[1, :conv_out] = np.repeat(np.asarray(params['b_cv2'], np.float32), L2)
    b_slab[2, :H] = np.asarray(params['b_fc1'], np.float32)
    b_slab[3, :H] = np.asarray(params['b_fc2'], np.float32)
    b_slab[4, :action_dim] = np.asarray(params['b_fc3'], np.float32)

    prepped = {
        't1': jnp.asarray(T1p, compute_dtype),
        't2': jnp.asarray(T2, compute_dtype),
        'w': jnp.asarray(w_slab, compute_dtype),
        'b': jnp.asarray(b_slab, jnp.float32),
    }
    meta = ActorMeta(lidar_dim, Lp, L1, L2, non_lidar_dim, NLp, H, action_dim)
    return prepped, meta


# ----------------------------------------------------------------------------
# Pallas kernel
# ----------------------------------------------------------------------------

def _actor_kernel(xin_ref, t1_ref, t2_ref, w_ref, b_ref, o_ref, *,
                  Lp, NLp, c1w, conv_out, H):
    f32 = jnp.float32
    cdt = xin_ref.dtype

    # Packed activations: [lidar (Lp, zero-padded) | non_lidar (NLp, zero-padded)]
    x = xin_ref[:, :Lp]
    nl = xin_ref[:, Lp:Lp + NLp]

    # Packed biases (f32 rows, static offsets).
    b1 = b_ref[0:1, :c1w]
    b2 = b_ref[1:2, :conv_out]
    bf1 = b_ref[2:3, :H]
    bf2 = b_ref[3:4, :H]
    bf3 = b_ref[4:5, :H]

    # Packed FC weights (static, sublane-aligned row offsets).
    w_fc1 = w_ref[0:conv_out, :]
    w2a = w_ref[conv_out:conv_out + H, :]
    w2b = w_ref[conv_out + H:conv_out + H + NLp, :]
    w3 = w_ref[conv_out + H + NLp:conv_out + 2 * H + NLp, :]

    # conv1 (Toeplitz matmul) + bias + relu
    h = jnp.maximum(jnp.dot(x, t1_ref[...], preferred_element_type=f32) + b1, 0.0)
    # conv2 + bias + relu  (the extra relu in Actor.forward is idempotent)
    h = jnp.maximum(jnp.dot(h.astype(cdt), t2_ref[...],
                            preferred_element_type=f32) + b2, 0.0)
    # fc1 + relu  (input is the channel-major flattened conv output)
    h = jnp.maximum(jnp.dot(h.astype(cdt), w_fc1,
                            preferred_element_type=f32) + bf1, 0.0)
    # fc2 over concat([h, non_lidar]) == h @ W2a + non_lidar @ W2b (weight split)
    z = (jnp.dot(h.astype(cdt), w2a, preferred_element_type=f32)
         + jnp.dot(nl, w2b, preferred_element_type=f32) + bf2)
    h = jnp.maximum(z, 0.0)
    # fc3 (no activation); output columns beyond action_dim are zero-padded.
    o_ref[...] = jnp.dot(h.astype(cdt), w3, preferred_element_type=f32) + bf3


# ----------------------------------------------------------------------------
# Jitted hot path
# ----------------------------------------------------------------------------

@partial(jax.jit, static_argnames=("meta",))
def actor_forward(lidar, non_lidar, prepped, *, meta):
    m = meta
    B = lidar.shape[0]
    cdt = prepped['t1'].dtype
    c1w, conv_out, H, A = 32 * m.l1, 32 * m.l2, m.hidden, m.action_dim

    # Batch tile: multiple of 16 (bf16 sublane tile); 256 amortizes overhead at scale.
    tile_b = min(_round_up(max(B, 16), 16), 256)
    B_pad = _round_up(B, tile_b)

    # Pack lidar + non_lidar into one lane-aligned activation slab (zero padded).
    x = lidar.reshape(B, m.lidar_dim).astype(cdt)
    xin = jnp.zeros((B_pad, m.lidar_pad + m.non_lidar_pad), cdt)
    xin = xin.at[:B, :m.lidar_dim].set(x)
    xin = xin.at[:B, m.lidar_pad:m.lidar_pad + m.non_lidar_dim].set(
        non_lidar.astype(cdt))

    kernel = partial(_actor_kernel, Lp=m.lidar_pad, NLp=m.non_lidar_pad,
                     c1w=c1w, conv_out=conv_out, H=H)

    flops = 2 * B_pad * (m.lidar_pad * c1w + c1w * conv_out + conv_out * H
                         + (H + m.non_lidar_pad) * H + H * H)
    bytes_accessed = int(xin.size) * xin.dtype.itemsize \
        + sum(int(v.size) * v.dtype.itemsize for v in prepped.values()) \
        + B_pad * H * 4

    out = pl.pallas_call(
        kernel,
        out_shape=jax.ShapeDtypeStruct((B_pad, H), jnp.float32),
        grid_spec=pltpu.PrefetchScalarGridSpec(
            num_scalar_prefetch=0,
            grid=(B_pad // tile_b,),
            in_specs=[
                pl.BlockSpec((tile_b, m.lidar_pad + m.non_lidar_pad),
                             lambda i: (i, 0)),
                pl.BlockSpec(prepped['t1'].shape, lambda i: (0, 0)),
                pl.BlockSpec(prepped['t2'].shape, lambda i: (0, 0)),
                pl.BlockSpec(prepped['w'].shape, lambda i: (0, 0)),
                pl.BlockSpec(prepped['b'].shape, lambda i: (0, 0)),
            ],
            out_specs=pl.BlockSpec((tile_b, H), lambda i: (i, 0)),
        ),
        compiler_params=pltpu.CompilerParams(
            dimension_semantics=("parallel",),
            vmem_limit_bytes=32 * 1024 * 1024,
        ),
        cost_estimate=pl.CostEstimate(flops=flops, transcendentals=0,
                                      bytes_accessed=bytes_accessed),
    )(xin, prepped['t1'], prepped['t2'], prepped['w'], prepped['b'])

    return out[:B, :A].astype(jnp.float32)


# ----------------------------------------------------------------------------
# Pure-JAX reference (same math as the PyTorch module, with intended flatten)
# ----------------------------------------------------------------------------

def ref_forward(lidar, non_lidar, p):
    h = jax.lax.conv_general_dilated(lidar, p['w_cv1'], (2,), [(6, 6)],
                                     dimension_numbers=('NCH', 'OIH', 'NCH'))
    h = jax.nn.relu(h + p['b_cv1'][None, :, None])
    h = jax.lax.conv_general_dilated(h, p['w_cv2'], (2,), [(1, 1)],
                                     dimension_numbers=('NCH', 'OIH', 'NCH'))
    h = jax.nn.relu(h + p['b_cv2'][None, :, None])
    h = h.reshape(h.shape[0], -1)
    h = jax.nn.relu(h @ p['w_fc1'].T + p['b_fc1'])
    h = jnp.concatenate([h, non_lidar], axis=-1)
    h = jax.nn.relu(h @ p['w_fc2'].T + p['b_fc2'])
    return h @ p['w_fc3'].T + p['b_fc3']


def init_params(key, lidar_dim, non_lidar_dim, action_dim):
    L1 = conv1d_out_len(lidar_dim, 5, 2, 6)
    L2 = conv1d_out_len(L1, 3, 2, 1)
    conv_out = 32 * L2
    ks = jax.random.split(key, 10)

    def unif(k, shape, fan_in):
        b = 1.0 / jnp.sqrt(jnp.float32(fan_in))
        return jax.random.uniform(k, shape, jnp.float32, -b, b)

    def xavier(k, shape):  # shape = (fan_out, fan_in)
        a = jnp.sqrt(6.0 / (shape[0] + shape[1]))
        return jax.random.uniform(k, shape, jnp.float32, -a, a)

    return {
        'w_cv1': unif(ks[0], (32, 1, 5), 1 * 5),
        'b_cv1': unif(ks[1], (32,), 1 * 5),
        'w_cv2': unif(ks[2], (32, 32, 3), 32 * 3),
        'b_cv2': unif(ks[3], (32,), 32 * 3),
        'w_fc1': xavier(ks[4], (64, conv_out)),
        'b_fc1': unif(ks[5], (64,), conv_out),
        'w_fc2': xavier(ks[6], (64, 64 + non_lidar_dim)),
        'b_fc2': unif(ks[7], (64,), 64 + non_lidar_dim),
        'w_fc3': unif(ks[8], (action_dim, 64), 64),
        'b_fc3': unif(ks[9], (action_dim,), 64),
    }


if __name__ == "__main__":
    B, LIDAR_DIM, NON_LIDAR_DIM, ACTION_DIM = 2, 16, 4, 2
    key = jax.random.PRNGKey(0)
    k_lidar, k_nl, k_params = jax.random.split(key, 3)

    lidar = jax.random.normal(k_lidar, (B, 1, LIDAR_DIM), jnp.float32)  # NCL, like PyTorch
    non_lidar = jax.random.normal(k_nl, (B, NON_LIDAR_DIM), jnp.float32)
    params = init_params(k_params, LIDAR_DIM, NON_LIDAR_DIM, ACTION_DIM)

    ref = ref_forward(lidar, non_lidar, params)

    # f32 compute path: tight numerical check of the kernel math.
    prepped32, meta32 = prepare_actor_params(params, LIDAR_DIM, NON_LIDAR_DIM,
                                             compute_dtype=jnp.float32)
    out32 = jax.block_until_ready(actor_forward(lidar, non_lidar, prepped32, meta=meta32))
    assert out32.shape == (B, ACTION_DIM), out32.shape
    assert jnp.allclose(out32, ref, atol=1e-4, rtol=1e-4), (out32, ref)

    # bf16 compute path (recommended on v6e/v7x): half the weight DMA bytes,
    # native MXU bf16 rate, f32 accumulation inside the kernel.
    prepped16, meta16 = prepare_actor_params(params, LIDAR_DIM, NON_LIDAR_DIM,
                                             compute_dtype=jnp.bfloat16)
    out16 = jax.block_until_ready(actor_forward(lidar, non_lidar, prepped16, meta=meta16))
    assert out16.shape == (B, ACTION_DIM), out16.shape
    assert jnp.allclose(out16, ref, atol=5e-2, rtol=5e-2), (out16, ref)

    print("KERNEL_OK")
</pallas_src>

<mosaic_0001>
module attributes {stable_mosaic.version = 11 : i64} {
  func.func @_actor_kernel(%arg0: i32, %arg1: memref<16x144xf32, #tpu.memory_space<vmem>>, %arg2: memref<128x384xf32, #tpu.memory_space<vmem>>, %arg3: memref<384x192xf32, #tpu.memory_space<vmem>>, %arg4: memref<336x64xf32, #tpu.memory_space<vmem>>, %arg5: memref<8x384xf32, #tpu.memory_space<vmem>>, %arg6: memref<16x64xf32, #tpu.memory_space<vmem>>) attributes {dimension_semantics = [#tpu.dimension_semantics<parallel>], iteration_bounds = array<i64: 1>, scalar_prefetch = 0 : i64, scratch_operands = 0 : i64, tpu.core_type = #tpu.core_type<tc>, window_params = [{transform_indices = @transform_0, window_bounds = array<i64: 16, 144>}, {pipeline_mode = #tpu.pipeline_mode<synchronous>, transform_indices = @transform_1, window_bounds = array<i64: 128, 384>}, {pipeline_mode = #tpu.pipeline_mode<synchronous>, transform_indices = @transform_2, window_bounds = array<i64: 384, 192>}, {pipeline_mode = #tpu.pipeline_mode<synchronous>, transform_indices = @transform_3, window_bounds = array<i64: 336, 64>}, {pipeline_mode = #tpu.pipeline_mode<synchronous>, transform_indices = @transform_4, window_bounds = array<i64: 8, 384>}, {transform_indices = @transform_5, window_bounds = array<i64: 16, 64>}]} {
    %c0 = arith.constant 0 : index
    %c0_0 = arith.constant 0 : index
    %0 = vector.load %arg1[%c0, %c0_0] : memref<16x144xf32, #tpu.memory_space<vmem>>, vector<16x128xf32>
    %c0_1 = arith.constant 0 : index
    %c128 = arith.constant 128 : index
    %1 = vector.load %arg1[%c0_1, %c128] : memref<16x144xf32, #tpu.memory_space<vmem>>, vector<16x16xf32>
    %c0_2 = arith.constant 0 : index
    %c0_3 = arith.constant 0 : index
    %2 = vector.load %arg5[%c0_2, %c0_3] : memref<8x384xf32, #tpu.memory_space<vmem>>, vector<1x384xf32>
    %c1 = arith.constant 1 : index
    %c0_4 = arith.constant 0 : index
    %3 = vector.load %arg5[%c1, %c0_4] : memref<8x384xf32, #tpu.memory_space<vmem>>, vector<1x192xf32>
    %c2 = arith.constant 2 : index
    %c0_5 = arith.constant 0 : index
    %4 = vector.load %arg5[%c2, %c0_5] : memref<8x384xf32, #tpu.memory_space<vmem>>, vector<1x64xf32>
    %c3 = arith.constant 3 : index
    %c0_6 = arith.constant 0 : index
    %5 = vector.load %arg5[%c3, %c0_6] : memref<8x384xf32, #tpu.memory_space<vmem>>, vector<1x64xf32>
    %c4 = arith.constant 4 : index
    %c0_7 = arith.constant 0 : index
    %6 = vector.load %arg5[%c4, %c0_7] : memref<8x384xf32, #tpu.memory_space<vmem>>, vector<1x64xf32>
    %c0_8 = arith.constant 0 : index
    %c0_9 = arith.constant 0 : index
    %7 = vector.load %arg4[%c0_8, %c0_9] : memref<336x64xf32, #tpu.memory_space<vmem>>, vector<192x64xf32>
    %c192 = arith.constant 192 : index
    %c0_10 = arith.constant 0 : index
    %8 = vector.load %arg4[%c192, %c0_10] : memref<336x64xf32, #tpu.memory_space<vmem>>, vector<64x64xf32>
    %c256 = arith.constant 256 : index
    %c0_11 = arith.constant 0 : index
    %9 = vector.load %arg4[%c256, %c0_11] : memref<336x64xf32, #tpu.memory_space<vmem>>, vector<16x64xf32>
    %c272 = arith.constant 272 : index
    %c0_12 = arith.constant 0 : index
    %10 = vector.load %arg4[%c272, %c0_12] : memref<336x64xf32, #tpu.memory_space<vmem>>, vector<64x64xf32>
    %c0_13 = arith.constant 0 : index
    %c0_14 = arith.constant 0 : index
    %11 = vector.load %arg2[%c0_13, %c0_14] : memref<128x384xf32, #tpu.memory_space<vmem>>, vector<128x384xf32>
    %cst = arith.constant dense<0.000000e+00> : vector<16x384xf32>
    %12 = tpu.matmul %0, %11, %cst {dimension_numbers = #tpu.dot_dimension_numbers<[1], [0], [0], [1], [0, 0, 1, 1], [], []>} : vector<16x128xf32>, vector<128x384xf32>, vector<16x384xf32> -> vector<16x384xf32>
    %13 = vector.broadcast %2 : vector<1x384xf32> to vector<16x384xf32>
    %14 = arith.addf %12, %13 : vector<16x384xf32>
    %cst_15 = arith.constant 0.000000e+00 : f32
    %15 = vector.broadcast %cst_15 : f32 to vector<16x384xf32>
    %16 = arith.maximumf %14, %15 : vector<16x384xf32>
    %c0_16 = arith.constant 0 : index
    %c0_17 = arith.constant 0 : index
    %17 = vector.load %arg3[%c0_16, %c0_17] : memref<384x192xf32, #tpu.memory_space<vmem>>, vector<384x192xf32>
    %cst_18 = arith.constant dense<0.000000e+00> : vector<16x192xf32>
    %18 = tpu.matmul %16, %17, %cst_18 {dimension_numbers = #tpu.dot_dimension_numbers<[1], [0], [0], [1], [0, 0, 1, 1], [], []>} : vector<16x384xf32>, vector<384x192xf32>, vector<16x192xf32> -> vector<16x192xf32>
    %19 = vector.broadcast %3 : vector<1x192xf32> to vector<16x192xf32>
    %20 = arith.addf %18, %19 : vector<16x192xf32>
    %cst_19 = arith.constant 0.000000e+00 : f32
    %21 = vector.broadcast %cst_19 : f32 to vector<16x192xf32>
    %22 = arith.maximumf %20, %21 : vector<16x192xf32>
    %cst_20 = arith.constant dense<0.000000e+00> : vector<16x64xf32>
    %23 = tpu.matmul %22, %7, %cst_20 {dimension_numbers = #tpu.dot_dimension_numbers<[1], [0], [0], [1], [0, 0, 1, 1], [], []>} : vector<16x192xf32>, vector<192x64xf32>, vector<16x64xf32> -> vector<16x64xf32>
    %24 = vector.broadcast %4 : vector<1x64xf32> to vector<16x64xf32>
    %25 = arith.addf %23, %24 : vector<16x64xf32>
    %cst_21 = arith.constant 0.000000e+00 : f32
    %26 = vector.broadcast %cst_21 : f32 to vector<16x64xf32>
    %27 = arith.maximumf %25, %26 : vector<16x64xf32>
    %cst_22 = arith.constant dense<0.000000e+00> : vector<16x64xf32>
    %28 = tpu.matmul %27, %8, %cst_22 {dimension_numbers = #tpu.dot_dimension_numbers<[1], [0], [0], [1], [0, 0, 1, 1], [], []>} : vector<16x64xf32>, vector<64x64xf32>, vector<16x64xf32> -> vector<16x64xf32>
    %cst_23 = arith.constant dense<0.000000e+00> : vector<16x64xf32>
    %29 = tpu.matmul %1, %9, %cst_23 {dimension_numbers = #tpu.dot_dimension_numbers<[1], [0], [0], [1], [0, 0, 1, 1], [], []>} : vector<16x16xf32>, vector<16x64xf32>, vector<16x64xf32> -> vector<16x64xf32>
    %30 = arith.addf %28, %29 : vector<16x64xf32>
    %31 = vector.broadcast %5 : vector<1x64xf32> to vector<16x64xf32>
    %32 = arith.addf %30, %31 : vector<16x64xf32>
    %cst_24 = arith.constant 0.000000e+00 : f32
    %33 = vector.broadcast %cst_24 : f32 to vector<16x64xf32>
    %34 = arith.maximumf %32, %33 : vector<16x64xf32>
    %cst_25 = arith.constant dense<0.000000e+00> : vector<16x64xf32>
    %35 = tpu.matmul %34, %10, %cst_25 {dimension_numbers = #tpu.dot_dimension_numbers<[1], [0], [0], [1], [0, 0, 1, 1], [], []>} : vector<16x64xf32>, vector<64x64xf32>, vector<16x64xf32> -> vector<16x64xf32>
    %36 = vector.broadcast %6 : vector<1x64xf32> to vector<16x64xf32>
    %37 = arith.addf %35, %36 : vector<16x64xf32>
    %c0_26 = arith.constant 0 : index
    %c0_27 = arith.constant 0 : index
    %38 = vector.load %arg6[%c0_26, %c0_27] : memref<16x64xf32, #tpu.memory_space<vmem>>, vector<16x64xf32>
    tpu.vector_store %arg6[%c0_26, %c0_27], %37 {strides = array<i32>} : memref<16x64xf32, #tpu.memory_space<vmem>>, vector<16x64xf32>,
    return
  }
  func.func @transform_0(%arg0: i32) -> (i32, i32) {
    %c0_i32 = arith.constant 0 : i32
    %c0_i32_0 = arith.constant 0 : i32
    return %arg0, %c0_i32 : i32, i32
  }
  func.func @transform_1(%arg0: i32) -> (i32, i32) {
    %c0_i32 = arith.constant 0 : i32
    %c0_i32_0 = arith.constant 0 : i32
    %c0_i32_1 = arith.constant 0 : i32
    return %c0_i32, %c0_i32_0 : i32, i32
  }
  func.func @transform_2(%arg0: i32) -> (i32, i32) {
    %c0_i32 = arith.constant 0 : i32
    %c0_i32_0 = arith.constant 0 : i32
    %c0_i32_1 = arith.constant 0 : i32
    return %c0_i32, %c0_i32_0 : i32, i32
  }
  func.func @transform_3(%arg0: i32) -> (i32, i32) {
    %c0_i32 = arith.constant 0 : i32
    %c0_i32_0 = arith.constant 0 : i32
    %c0_i32_1 = arith.constant 0 : i32
    return %c0_i32, %c0_i32_0 : i32, i32
  }
  func.func @transform_4(%arg0: i32) -> (i32, i32) {
    %c0_i32 = arith.constant 0 : i32
    %c0_i32_0 = arith.constant 0 : i32
    %c0_i32_1 = arith.constant 0 : i32
    return %c0_i32, %c0_i32_0 : i32, i32
  }
  func.func @transform_5(%arg0: i32) -> (i32, i32) {
    %c0_i32 = arith.constant 0 : i32
    %c0_i32_0 = arith.constant 0 : i32
    return %arg0, %c0_i32 : i32, i32
  }
}

</mosaic_0001>

<bundles_post_ra>
// kernel: actor_forward.1
= control target key start
LH: loop header
LB: loop body
LE: loop exit
PB: predicated region body
PF: predicated region fallthrough
CT: control target
= control target key end

     0   :  { %vm445_vm0 = vcmask 523264   ;;  %vm500_vm1 = vcmask 130048   ;;  %s1236_s1 = inlined_call_operand.vmem [shape: f32[128,384], index: 1, kind: input, shape index: {}]   ;;  %s1237_s2 = inlined_call_operand.vmem [shape: f32[384,192], index: 2, kind: input, shape index: {}]   ;;  %s1238_s0 = inlined_call_operand.vmem [shape: f32[16,144], index: 0, kind: input, shape index: {}]   ;;  %s1239_s4 = inlined_call_operand.vmem [shape: f32[8,384], index: 4, kind: input, shape index: {}]   ;;  %s1240_s3 = inlined_call_operand.vmem [shape: f32[336,64], index: 3, kind: input, shape index: {}]   ;;  %s1241_s5 = inlined_call_operand.vmem [shape: f32[16,64], index: 5, kind: output, shape index: {}]  }
   0x1   :  { %v117_v0 = vld [vmem:[%s1236_s1 + $0x168] sm:$0xff]  ;;  %v114_v1 = vld [vmem:[%s1236_s1 + $0x150] sm:$0xff]  ;;  %v119_v2 = vld [vmem:[%s1236_s1 + $0x178] sm:$0xff] }
   0x2   :  { %127 = vmatpush.msra.mxu0 %v117_v0  ;;  %v116_v3 = vld [vmem:[%s1236_s1 + $0x160] sm:$0xff]  ;;  %v111_v4 = vld [vmem:[%s1236_s1 + $0x138] sm:$0xff]  ;;  %173 = vmatpush.msra.mxu2 %v119_v2  ;;  %v118_v5 = vld [vmem:[%s1236_s1 + $0x170] sm:$0xff] }
   0x3   :  { %150 = vmatpush.msra.mxu1 %v118_v5  ;;  %v113_v6 = vld [vmem:[%s1236_s1 + $0x148] sm:$0xff]  ;;  %v115_v7 = vld [vmem:[%s1236_s1 + $0x158] sm:$0xff]  ;;  %v108_v8 = vld [vmem:[%s1236_s1 + $0x120] sm:$0xff] }
   0x4   :  { %128 = vmatpush.msra.mxu0 %v114_v1  ;;  %174 = vmatpush.msra.mxu2 %v116_v3  ;;  %v112_v9 = vld [vmem:[%s1236_s1 + $0x140] sm:$0xff]  ;;  %v110_v10 = vld [vmem:[%s1236_s1 + $0x130] sm:$0xff]  ;;  %v105_v11 = vld [vmem:[%s1236_s1 + $0x108] sm:$0xff] }
   0x5   :  { %151 = vmatpush.msra.mxu1 %v115_v7  ;;  %v109_v12 = vld [vmem:[%s1236_s1 + $0x128] sm:$0xff]  ;;  %v107_v13 = vld [vmem:[%s1236_s1 + $0x118] sm:$0xff]  ;;  %v102_v14 = vld [vmem:[%s1236_s1 + $0xf0] sm:$0xff] }
   0x6   :  { %129 = vmatpush.msra.mxu0 %v111_v4  ;;  %175 = vmatpush.msra.mxu2 %v113_v6  ;;  %v106_v15 = vld [vmem:[%s1236_s1 + $0x110] sm:$0xff]  ;;  %v104_v16 = vld [vmem:[%s1236_s1 + $0x100] sm:$0xff]  ;;  %v99_v17 = vld [vmem:[%s1236_s1 + $0xd8] sm:$0xff] }
   0x7   :  { %152 = vmatpush.msra.mxu1 %v112_v9  ;;  %v103_v18 = vld [vmem:[%s1236_s1 + $0xf8] sm:$0xff]  ;;  %v101_v19 = vld [vmem:[%s1236_s1 + $0xe8] sm:$0xff]  ;;  %v96_v20 = vld [vmem:[%s1236_s1 + $0xc0] sm:$0xff] }
   0x8   :  { %130 = vmatpush.msra.mxu0 %v108_v8  ;;  %176 = vmatpush.msra.mxu2 %v110_v10  ;;  %v100_v21 = vld [vmem:[%s1236_s1 + $0xe0] sm:$0xff]  ;;  %v98_v22 = vld [vmem:[%s1236_s1 + $0xd0] sm:$0xff]  ;;  %v93_v23 = vld [vmem:[%s1236_s1 + $0xa8] sm:$0xff] }
   0x9   :  { %153 = vmatpush.msra.mxu1 %v109_v12  ;;  %v97_v24 = vld [vmem:[%s1236_s1 + $0xc8] sm:$0xff]  ;;  %v95_v25 = vld [vmem:[%s1236_s1 + $0xb8] sm:$0xff]  ;;  %v90_v26 = vld [vmem:[%s1236_s1 + $0x90] sm:$0xff] }
   0xa   :  { %131 = vmatpush.msra.mxu0 %v105_v11  ;;  %177 = vmatpush.msra.mxu2 %v107_v13  ;;  %v94_v27 = vld [vmem:[%s1236_s1 + $0xb0] sm:$0xff]  ;;  %v92_v29 = vld [vmem:[%s1236_s1 + $0xa0] sm:$0xff]  ;;  %v87_v31 = vld [vmem:[%s1236_s1 + $0x78] sm:$0xff] }
   0xb   :  { %154 = vmatpush.msra.mxu1 %v106_v15  ;;  %v232_v28 = vld [vmem:[%s1237_s2 + $0xf0] sm:$0xff]  ;;  %v230_v30 = vld [vmem:[%s1237_s2 + $0xe0] sm:$0xff]  ;;  %v91_v32 = vld [vmem:[%s1236_s1 + $0x98] sm:$0xff] }
   0xc   :  { %132 = vmatpush.msra.mxu0 %v102_v14  ;;  %178 = vmatpush.msra.mxu2 %v104_v16  ;;  %v89_v33 = vld [vmem:[%s1236_s1 + $0x88] sm:$0xff]  ;;  %v228_v34 = vld [vmem:[%s1237_s2 + $0xd0] sm:$0xff]  ;;  %v84_v35 = vld [vmem:[%s1236_s1 + $0x60] sm:$0xff] }
   0xd   :  { %155 = vmatpush.msra.mxu1 %v103_v18  ;;  %303 = vmatpush.msra.mxu3 %v232_v28  ;;  %v88_v36 = vld [vmem:[%s1236_s1 + $0x80] sm:$0xff]  ;;  %v86_v37 = vld [vmem:[%s1236_s1 + $0x70] sm:$0xff]  ;;  %v81_v39 = vld [vmem:[%s1236_s1 + $0x48] sm:$0xff] }
   0xe   :  { %133 = vmatpush.msra.mxu0 %v99_v17  ;;  %179 = vmatpush.msra.mxu2 %v101_v19  ;;  %v226_v38 = vld [vmem:[%s1237_s2 + $0xc0] sm:$0xff]  ;;  %v85_v40 = vld [vmem:[%s1236_s1 + $0x68] sm:$0xff]  ;;  %v83_v41 = vld [vmem:[%s1236_s1 + $0x58] sm:$0xff] }
   0xf   :  { %156 = vmatpush.msra.mxu1 %v100_v21  ;;  %304 = vmatpush.msra.mxu3 %v230_v30  ;;  %v224_v42 = vld [vmem:[%s1237_s2 + $0xb0] sm:$0xff]  ;;  %v80_v45 = vld [vmem:[%s1236_s1 + $0x40] sm:$0xff]  ;;  %v75_v47 = vld [vmem:[%s1236_s1 + $0x18] sm:$0xff] }
  0x10   :  { %134 = vmatpush.msra.mxu0 %v96_v20  ;;  %180 = vmatpush.msra.mxu2 %v98_v22  ;;  %v78_v43 = vld [vmem:[%s1236_s1 + $0x30] sm:$0xff]  ;;  %v222_v46 = vld [vmem:[%s1237_s2 + $0xa0] sm:$0xff]  ;;  %v79_v48 = vld [vmem:[%s1236_s1 + $0x38] sm:$0xff] }
  0x11   :  { %157 = vmatpush.msra.mxu1 %v97_v24  ;;  %305 = vmatpush.msra.mxu3 %v228_v34  ;;  %v82_v44 = vld [vmem:[%s1236_s1 + $0x50] sm:$0xff]  ;;  %v77_v49 = vld [vmem:[%s1236_s1 + $0x28] sm:$0xff]  ;;  %v72_v51 = vld [vmem:[%s1236_s1] sm:$0xff] }
  0x12   :  { %135 = vmatpush.msra.mxu0 %v93_v23  ;;  %181 = vmatpush.msra.mxu2 %v95_v25  ;;  %v220_v50 = vld [vmem:[%s1237_s2 + $0x90] sm:$0xff]  ;;  %v76_v52 = vld [vmem:[%s1236_s1 + $0x20] sm:$0xff]  ;;  %v73_v55 = vld [vmem:[%s1236_s1 + $0x8] sm:$0xff] }
  0x13   :  { %158 = vmatpush.msra.mxu1 %v94_v27  ;;  %306 = vmatpush.msra.mxu3 %v226_v38  ;;  %v20_v53 = vld [vmem:[%s1238_s0] sm:$0xff]  ;;  %v74_v54 = vld [vmem:[%s1236_s1 + $0x10] sm:$0xff]  ;;  %v233_v58 = vld [vmem:[%s1237_s2 + $0xf8] sm:$0xff] }
  0x14   :  { %136 = vmatpush.msra.mxu0 %v90_v26  ;;  %182 = vmatpush.msra.mxu2 %v92_v29  ;;  %v264_v56 = vld [vmem:[%s1237_s2 + $0x1f0] sm:$0xff]  ;;  %v218_v57 = vld [vmem:[%s1237_s2 + $0x80] sm:$0xff]  ;;  %v231_v62 = vld [vmem:[%s1237_s2 + $0xe8] sm:$0xff] }
  0x15   :  { %159 = vmatpush.msra.mxu1 %v91_v32  ;;  %307 = vmatpush.msra.mxu3 %v224_v42  ;;  %v262_v59 = vld [vmem:[%s1237_s2 + $0x1e0] sm:$0xff]  ;;  %v296_v60 = vld [vmem:[%s1237_s2 + $0x2f0] sm:$0xff]  ;;  %v229_v2 = vld [vmem:[%s1237_s2 + $0xd8] sm:$0xff] }
  0x16   :  { %137 = vmatpush.msra.mxu0 %v87_v31  ;;  %183 = vmatpush.msra.mxu2 %v89_v33  ;;  %v216_v61 = vld [vmem:[%s1237_s2 + $0x70] sm:$0xff]  ;;  %v294_v0 = vld [vmem:[%s1237_s2 + $0x2e0] sm:$0xff]  ;;  %v227_v8 = vld [vmem:[%s1237_s2 + $0xc8] sm:$0xff] }
  0x17   :  { %160 = vmatpush.msra.mxu1 %v88_v36  ;;  %308 = vmatpush.msra.mxu3 %v222_v46  ;;  %v260_v63 = vld [vmem:[%s1237_s2 + $0x1d0] sm:$0xff]  ;;  %v214_v1 = vld [vmem:[%s1237_s2 + $0x60] sm:$0xff]  ;;  %v225_v12 = vld [vmem:[%s1237_s2 + $0xb8] sm:$0xff] }
  0x18   :  { %138 = vmatpush.msra.mxu0 %v84_v35  ;;  %184 = vmatpush.msra.mxu2 %v86_v37  ;;  %v21_v3 = vld [vmem:[%s1238_s0 + $0x10] sm:$0xff]  ;;  %v258_v5 = vld [vmem:[%s1237_s2 + $0x1c0] sm:$0xff]  ;;  %v223_v16 = vld [vmem:[%s1237_s2 + $0xa8] sm:$0xff] }
  0x19   :  { %161 = vmatpush.msra.mxu1 %v85_v40  ;;  %309 = vmatpush.msra.mxu3 %v220_v50  ;;  %v292_v4 = vld [vmem:[%s1237_s2 + $0x2d0] sm:$0xff]  ;;  %v210_v9 = vld [vmem:[%s1237_s2 + $0x40] sm:$0xff]  ;;  %v221_v20 = vld [vmem:[%s1237_s2 + $0x98] sm:$0xff] }
  0x1a   :  { %139 = vmatpush.msra.mxu0 %v81_v39  ;;  %185 = vmatpush.msra.mxu2 %v83_v41  ;;  %v212_v6 = vld [vmem:[%s1237_s2 + $0x50] sm:$0xff]  ;;  %v290_v10 = vld [vmem:[%s1237_s2 + $0x2c0] sm:$0xff]  ;;  %v219_v24 = vld [vmem:[%s1237_s2 + $0x88] sm:$0xff] }
  0x1b   :  { %162 = vmatpush.msra.mxu1 %v82_v44  ;;  %310 = vmatpush.msra.mxu3 %v218_v57  ;;  %v256_v7 = vld [vmem:[%s1237_s2 + $0x1b0] sm:$0xff]  ;;  %v254_v11 = vld [vmem:[%s1237_s2 + $0x1a0] sm:$0xff]  ;;  %v217_v28 = vld [vmem:[%s1237_s2 + $0x78] sm:$0xff] }
  0x1c   :  { %140 = vmatpush.msra.mxu0 %v78_v43  ;;  %186 = vmatpush.msra.mxu2 %v80_v45  ;;  %v208_v13 = vld [vmem:[%s1237_s2 + $0x30] sm:$0xff]  ;;  %v206_v17 = vld [vmem:[%s1237_s2 + $0x20] sm:$0xff]  ;;  %v265_v29 = vld [vmem:[%s1237_s2 + $0x1f8] sm:$0xff] }
  0x1d   :  { %163 = vmatpush.msra.mxu1 %v79_v48  ;;  %311 = vmatpush.msra.mxu3 %v216_v61  ;;  %v288_v14 = vld [vmem:[%s1237_s2 + $0x2b0] sm:$0xff]  ;;  %v286_v18 = vld [vmem:[%s1237_s2 + $0x2a0] sm:$0xff]  ;;  %v215_v31 = vld [vmem:[%s1237_s2 + $0x68] sm:$0xff] }
  0x1e   :  { %141 = vmatpush.msra.mxu0 %v75_v47  ;;  %187 = vmatpush.msra.mxu2 %v77_v49  ;;  %v252_v15 = vld [vmem:[%s1237_s2 + $0x190] sm:$0xff]  ;;  %v250_v19 = vld [vmem:[%s1237_s2 + $0x180] sm:$0xff]  ;;  %v263_v32 = vld [vmem:[%s1237_s2 + $0x1e8] sm:$0xff] }
  0x1f   :  { %164 = vmatpush.msra.mxu1 %v76_v52  ;;  %312 = vmatpush.msra.mxu3 %v214_v1  ;;  %v204_v21 = vld [vmem:[%s1237_s2 + $0x10] sm:$0xff]  ;;  %v202_v25 = vld [vmem:[%s1237_s2] sm:$0xff]  ;;  %v213_v34 = vld [vmem:[%s1237_s2 + $0x58] sm:$0xff] }
  0x20   :  { %142 = vmatpush.msra.mxu0 %v72_v51  ;;  %188 = vmatpush.msra.mxu2 %v74_v54  ;;  %v284_v22 = vld [vmem:[%s1237_s2 + $0x290] sm:$0xff]  ;;  %v282_v26 = vld [vmem:[%s1237_s2 + $0x280] sm:$0xff]  ;;  %v261_v35 = vld [vmem:[%s1237_s2 + $0x1d8] sm:$0xff] }
  0x21   :  { %143 = vmatmul.f32.vlgmr.msra.gmra.mxu0 %v20_v53  ;;  %189 = vmatmul.f32.vlgmr.msra.gmra.mxu2 %v20_v53  ;;  %v248_v23 = vld [vmem:[%s1237_s2 + $0x170] sm:$0xff]  ;;  %v246_v27 = vld [vmem:[%s1237_s2 + $0x160] sm:$0xff]  ;;  %v211_v37 = vld [vmem:[%s1237_s2 + $0x48] sm:$0xff] }
  0x22   :  { %165 = vmatpush.msra.mxu1 %v73_v55  ;;  %326 = vmatpush.msrb.mxu0 %v264_v56  ;;  %v244_v30 = vld [vmem:[%s1237_s2 + $0x150] sm:$0xff]  ;;  %v242_v33 = vld [vmem:[%s1237_s2 + $0x140] sm:$0xff]  ;;  %v259_v38 = vld [vmem:[%s1237_s2 + $0x1c8] sm:$0xff] }
  0x23   :  { %166 = vmatmul.f32.vlgmr.msra.gmra.mxu1 %v20_v53  ;;  %372 = vmatpush.msrb.mxu2 %v233_v58  ;;  %v240_v36 = vld [vmem:[%s1237_s2 + $0x130] sm:$0xff]  ;;  %v238_v39 = vld [vmem:[%s1237_s2 + $0x120] sm:$0xff]  ;;  %v209_v40 = vld [vmem:[%s1237_s2 + $0x38] sm:$0xff] }
  0x24   :  { %327 = vmatpush.msrb.mxu0 %v262_v59  ;;  %349 = vmatpush.msrb.mxu1 %v296_v60  ;;  %v257_v41 = vld [vmem:[%s1237_s2 + $0x1b8] sm:$0xff]  ;;  %v236_v42 = vld [vmem:[%s1237_s2 + $0x110] sm:$0xff]  ;;  %v234_v43 = vld [vmem:[%s1237_s2 + $0x100] sm:$0xff] }
  0x25   :  { %373 = vmatpush.msrb.mxu2 %v231_v62  ;;  %313 = vmatpush.msra.mxu3 %v212_v6  ;;  %v297_v44 = vld [vmem:[%s1237_s2 + $0x2f8] sm:$0xff]  ;;  %v280_v45 = vld [vmem:[%s1237_s2 + $0x270] sm:$0xff]  ;;  %v207_v46 = vld [vmem:[%s1237_s2 + $0x28] sm:$0xff] }
  0x26   :  { %328 = vmatpush.msrb.mxu0 %v260_v63  ;;  %350 = vmatpush.msrb.mxu1 %v294_v0  ;;  %v255_v47 = vld [vmem:[%s1237_s2 + $0x1a8] sm:$0xff]  ;;  %v278_v49 = vld [vmem:[%s1237_s2 + $0x260] sm:$0xff]  ;;  %v205_v50 = vld [vmem:[%s1237_s2 + $0x18] sm:$0xff] }
  0x27   :  { %374 = vmatpush.msrb.mxu2 %v229_v2  ;;  %314 = vmatpush.msra.mxu3 %v210_v9  ;;  %v295_v48 = vld [vmem:[%s1237_s2 + $0x2e8] sm:$0xff]  ;;  %v253_v51 = vld [vmem:[%s1237_s2 + $0x198] sm:$0xff]  ;;  %v276_v53 = vld [vmem:[%s1237_s2 + $0x250] sm:$0xff] }
  0x28   :  { %351 = vmatpush.msrb.mxu1 %v292_v4  ;;  %329 = vmatpush.msrb.mxu0 %v258_v5  ;;  %v293_v52 = vld [vmem:[%s1237_s2 + $0x2d8] sm:$0xff]  ;;  %v203_v54 = vld [vmem:[%s1237_s2 + $0x8] sm:$0xff]  ;;  %v274_v57 = vld [vmem:[%s1237_s2 + $0x240] sm:$0xff] }
  0x29   :  { %146 = vmatmul.f32.gmra.mxu0 %v21_v3  ;;  %192 = vmatmul.f32.gmra.mxu2 %v21_v3  ;;  %v251_v55 = vld [vmem:[%s1237_s2 + $0x188] sm:$0xff]  ;;  %v249_v58 = vld [vmem:[%s1237_s2 + $0x178] sm:$0xff]  ;;  %v272_v60 = vld [vmem:[%s1237_s2 + $0x230] sm:$0xff] }
  0x2a   :  { %330 = vmatpush.msrb.mxu0 %v256_v7  ;;  %375 = vmatpush.msrb.mxu2 %v227_v8  ;;  %v291_v56 = vld [vmem:[%s1237_s2 + $0x2c8] sm:$0xff]  ;;  %v289_v59 = vld [vmem:[%s1237_s2 + $0x2b8] sm:$0xff]  ;;  %v270_v63 = vld [vmem:[%s1237_s2 + $0x220] sm:$0xff] }
  0x2b   :  { %169 = vmatmul.f32.gmra.mxu1 %v21_v3  ;;  %315 = vmatpush.msra.mxu3 %v208_v13  ;;  %v247_v61 = vld [vmem:[%s1237_s2 + $0x168] sm:$0xff]  ;;  %v245_v0 = vld [vmem:[%s1237_s2 + $0x158] sm:$0xff]  ;;  %v268_v2 = vld [vmem:[%s1237_s2 + $0x210] sm:$0xff] }
  0x2c   :  { %352 = vmatpush.msrb.mxu1 %v290_v10  ;;  %331 = vmatpush.msrb.mxu0 %v254_v11  ;;  %v287_v62 = vld [vmem:[%s1237_s2 + $0x2a8] sm:$0xff]  ;;  %v285_v1 = vld [vmem:[%s1237_s2 + $0x298] sm:$0xff]  ;;  %v266_v5 = vld [vmem:[%s1237_s2 + $0x200] sm:$0xff] }
  0x2d   :  { %376 = vmatpush.msrb.mxu2 %v225_v12  ;;  %316 = vmatpush.msra.mxu3 %v206_v17  ;;  %v243_v3 = vld [vmem:[%s1237_s2 + $0x148] sm:$0xff]  ;;  %v241_v6 = vld [vmem:[%s1237_s2 + $0x138] sm:$0xff] }
  0x2e   :  { %353 = vmatpush.msrb.mxu1 %v288_v14  ;;  %332 = vmatpush.msrb.mxu0 %v252_v15  ;;  %v283_v4 = vld [vmem:[%s1237_s2 + $0x288] sm:$0xff]  ;;  %v281_v7 = vld [vmem:[%s1237_s2 + $0x278] sm:$0xff] }
  0x2f   :  { %377 = vmatpush.msrb.mxu2 %v223_v16  ;;  %317 = vmatpush.msra.mxu3 %v204_v21  ;;  %v239_v8 = vld [vmem:[%s1237_s2 + $0x128] sm:$0xff]  ;;  %v237_v10 = vld [vmem:[%s1237_s2 + $0x118] sm:$0xff] }
  0x30   :  { %354 = vmatpush.msrb.mxu1 %v286_v18  ;;  %333 = vmatpush.msrb.mxu0 %v250_v19  ;;  %v279_v9 = vld [vmem:[%s1237_s2 + $0x268] sm:$0xff]  ;;  %v277_v11 = vld [vmem:[%s1237_s2 + $0x258] sm:$0xff] }
  0x31   :  { %378 = vmatpush.msrb.mxu2 %v221_v20  ;;  %318 = vmatpush.msra.mxu3 %v202_v25  ;;  %v235_v12 = vld [vmem:[%s1237_s2 + $0x108] sm:$0xff]  ;;  %v273_v14 = vld [vmem:[%s1237_s2 + $0x238] sm:$0xff] }
  0x32   :  { %355 = vmatpush.msrb.mxu1 %v284_v22  ;;  %334 = vmatpush.msrb.mxu0 %v248_v23  ;;  %v275_v13 = vld [vmem:[%s1237_s2 + $0x248] sm:$0xff]  ;;  %v269_v16 = vld [vmem:[%s1237_s2 + $0x218] sm:$0xff]  ;;  %v44_v22 = vld [vmem:[%s1240_s3 + $0x70] sm:$0xff] }
  0x33   :  { %379 = vmatpush.msrb.mxu2 %v219_v24  ;;  %395 = vmatpush.msrb.mxu3 %v265_v29  ;;  %v271_v15 = vld [vmem:[%s1237_s2 + $0x228] sm:$0xff]  ;;  %v45_v21 = vld [vmem:[%s1240_s3 + $0x78] sm:$0xff]  ;;  %v42_v29 = vld [vmem:[%s1240_s3 + $0x60] sm:$0xff] }
  0x34   :  { %356 = vmatpush.msrb.mxu1 %v282_v26  ;;  %335 = vmatpush.msrb.mxu0 %v246_v27  ;;  %v24_v17 = vld [vmem:[%s1239_s4] ss:$8 sm:$0x7] }
  0x35   :  { %380 = vmatpush.msrb.mxu2 %v217_v28  ;;  %396 = vmatpush.msrb.mxu3 %v263_v32  ;;  %v267_v18 = vld [vmem:[%s1237_s2 + $0x208] sm:$0xff]  ;;  %v121_v19 = vperm.slane %v24_v17, 0  ;;  %v122_v20 = vperm.slane %v24_v17, 1  ;;  %v41_v32 = vld [vmem:[%s1240_s3 + $0x58] sm:$0xff] }
  0x36   :  { %336 = vmatpush.msrb.mxu0 %v244_v30  ;;  %357 = vmatpush.msrb.mxu1 %v280_v45  ;;  %v43_v25 = vld [vmem:[%s1240_s3 + $0x68] sm:$0xff]  ;;  %v123_v30 = vperm.slane %v24_v17, 2 }
  0x37   :  { %381 = vmatpush.msrb.mxu2 %v215_v31  ;;  %397 = vmatpush.msrb.mxu3 %v261_v35 }
  0x38   :  { %337 = vmatpush.msrb.mxu0 %v242_v33  ;;  %358 = vmatpush.msrb.mxu1 %v278_v49  ;;  %v36_v49 = vld [vmem:[%s1240_s3 + $0x30] sm:$0xff] }
  0x39   :  { %382 = vmatpush.msrb.mxu2 %v213_v34  ;;  %398 = vmatpush.msrb.mxu3 %v259_v38  ;;  %v40_v34 = vld [vmem:[%s1240_s3 + $0x50] sm:$0xff] }
  0x3a   :  { %338 = vmatpush.msrb.mxu0 %v240_v36  ;;  %359 = vmatpush.msrb.mxu1 %v276_v53  ;;  %v32_v53 = vld [vmem:[%s1240_s3 + $0x10] sm:$0xff] }
  0x3b   :  { %383 = vmatpush.msrb.mxu2 %v211_v37  ;;  %399 = vmatpush.msrb.mxu3 %v257_v41 }
  0x3c   :  { %339 = vmatpush.msrb.mxu0 %v238_v39  ;;  %360 = vmatpush.msrb.mxu1 %v274_v57  ;;  %v52_v57 = vld [vmem:[%s1240_s3 + $0xb0] sm:$0xff] }
  0x3d   :  { %384 = vmatpush.msrb.mxu2 %v209_v40  ;;  %400 = vmatpush.msrb.mxu3 %v255_v47 }
  0x3e   :  { %340 = vmatpush.msrb.mxu0 %v236_v42  ;;  %361 = vmatpush.msrb.mxu1 %v272_v60  ;;  %v39_v42 = vld [vmem:[%s1240_s3 + $0x48] sm:$0xff]  ;;  %v49_v60 = vld [vmem:[%s1240_s3 + $0x98] sm:$0xff] }
  0x3f   :  { %385 = vmatpush.msrb.mxu2 %v207_v46  ;;  %401 = vmatpush.msrb.mxu3 %v253_v51  ;;  %v37_v46 = vld [vmem:[%s1240_s3 + $0x38] sm:$0xff]  ;;  %v34_v51 = vld [vmem:[%s1240_s3 + $0x20] sm:$0xff] }
  0x40   :  { %341 = vmatpush.msrb.mxu0 %v234_v43  ;;  %362 = vmatpush.msrb.mxu1 %v270_v63  ;;  %v46_v63 = vld [vmem:[%s1240_s3 + $0x80] sm:$0xff] }
  0x41   :  { %386 = vmatpush.msrb.mxu2 %v205_v50  ;;  %402 = vmatpush.msrb.mxu3 %v251_v55  ;;  %v35_v50 = vld [vmem:[%s1240_s3 + $0x28] sm:$0xff]  ;;  %v53_v55 = vld [vmem:[%s1240_s3 + $0xb8] sm:$0xff] }
  0x42   :  { %418 = vmatpush.msra.mxu0 %v297_v44  ;;  %363 = vmatpush.msrb.mxu1 %v268_v2  ;;  %v38_v44 = vld [vmem:[%s1240_s3 + $0x40] sm:$0xff] }
  0x43   :  { %387 = vmatpush.msrb.mxu2 %v203_v54  ;;  %403 = vmatpush.msrb.mxu3 %v249_v58  ;;  %v31_v54 = vld [vmem:[%s1240_s3 + $0x8] sm:$0xff] }
  0x44   :  { %419 = vmatpush.msra.mxu0 %v295_v48  ;;  %364 = vmatpush.msrb.mxu1 %v266_v5  ;;  %v51_v58 = vld [vmem:[%s1240_s3 + $0xa8] sm:$0xff] }
  0x45   :  { %404 = vmatpush.msrb.mxu3 %v247_v61  ;;  %483 = vmatpush.msra.mxu2 %v53_v55  ;;  %v48_v61 = vld [vmem:[%s1240_s3 + $0x90] sm:$0xff] }
  0x46   :  { %420 = vmatpush.msra.mxu0 %v293_v52  ;;  %452 = vmatpush.msra.mxu1 %v45_v21  ;;  %v33_v52 = vld [vmem:[%s1240_s3 + $0x18] sm:$0xff] }
  0x47   :  { %405 = vmatpush.msrb.mxu3 %v245_v0  ;;  %484 = vmatpush.msra.mxu2 %v52_v57  ;;  %v598_v0 = vld [vmem:[%s1239_s4 + $0x1] ss:$8 sm:$0x3] }
  0x48   :  { %421 = vmatpush.msra.mxu0 %v291_v56  ;;  %453 = vmatpush.msra.mxu1 %v44_v22  ;;  %v30_v56 = vld [vmem:[%s1240_s3] sm:$0xff]  ;;  %v299_v2 = vperm.slane %v598_v0, 0 }
  0x49   :  { %406 = vmatpush.msrb.mxu3 %v243_v3  ;;  %485 = vmatpush.msra.mxu2 %v51_v58 }
  0x4a   :  { %422 = vmatpush.msra.mxu0 %v289_v59  ;;  %454 = vmatpush.msra.mxu1 %v43_v25  ;;  %v50_v59 = vld [vmem:[%s1240_s3 + $0xa0] sm:$0xff] }
  0x4b   :  { %407 = vmatpush.msrb.mxu3 %v241_v6  ;;  %486 = vmatpush.msra.mxu2 %v50_v59  ;;  %v66_v59 = vld [vmem:[%s1240_s3 + $0x120] sm:$0xff] }
  0x4c   :  { %423 = vmatpush.msra.mxu0 %v287_v62  ;;  %455 = vmatpush.msra.mxu1 %v42_v29  ;;  %v47_v62 = vld [vmem:[%s1240_s3 + $0x88] sm:$0xff] }
  0x4d   :  { %408 = vmatpush.msrb.mxu3 %v239_v8  ;;  %487 = vmatpush.msra.mxu2 %v49_v60  ;;  %v65_v60 = vld [vmem:[%s1240_s3 + $0x118] sm:$0xff] }
  0x4e   :  { %424 = vmatpush.msra.mxu0 %v285_v1  ;;  %456 = vmatpush.msra.mxu1 %v41_v32  ;;  %v61_v32 = vld [vmem:[%s1240_s3 + $0xf8] sm:$0xff] }
  0x4f   :  { %409 = vmatpush.msrb.mxu3 %v237_v10  ;;  %488 = vmatpush.msra.mxu2 %v48_v61  ;;  %v64_v61 = vld [vmem:[%s1240_s3 + $0x110] sm:$0xff] }
  0x50   :  { %425 = vmatpush.msra.mxu0 %v283_v4  ;;  %457 = vmatpush.msra.mxu1 %v40_v34  ;;  %v62_v34 = vld [vmem:[%s1240_s3 + $0x100] sm:$0xff] }
  0x51   :  { %410 = vmatpush.msrb.mxu3 %v235_v12  ;;  %489 = vmatpush.msra.mxu2 %v47_v62 }
  0x52   :  { %426 = vmatpush.msra.mxu0 %v281_v7  ;;  %458 = vmatpush.msra.mxu1 %v39_v42  ;;  %v23_v42 = vld [vmem:[%s1238_s0 + $0x18] sm:$0xff] }
  0x53   :  { %490 = vmatpush.msra.mxu2 %v46_v63  ;;  %v28_v63 = vld [vmem:[%s1239_s4 + $0x3] ss:$0 sm:$0xff] }
  0x54   :  { %427 = vmatpush.msra.mxu0 %v279_v9  ;;  %459 = vmatpush.msra.mxu1 %v38_v44  ;;  %v70_v44 = vld [vmem:[%s1240_s3 + $0x140] sm:$0xff] }
  0x56   :  { %428 = vmatpush.msra.mxu0 %v277_v11  ;;  %460 = vmatpush.msra.mxu1 %v37_v46  ;;  %v68_v46 = vld [vmem:[%s1240_s3 + $0x130] sm:$0xff] }
  0x58   :  { %429 = vmatpush.msra.mxu0 %v275_v13  ;;  %461 = vmatpush.msra.mxu1 %v36_v49  ;;  %v27_v49 = vld [vmem:[%s1239_s4 + $0x2] ss:$0 sm:$0xff] }
  0x5a   :  { %430 = vmatpush.msra.mxu0 %v273_v14  ;;  %462 = vmatpush.msra.mxu1 %v35_v50  ;;  %v300_v14 = vperm.slane %v598_v0, 1 }
  0x5c   :  { %431 = vmatpush.msra.mxu0 %v271_v15  ;;  %463 = vmatpush.msra.mxu1 %v34_v51 }
  0x5e   :  { %432 = vmatpush.msra.mxu0 %v269_v16  ;;  %464 = vmatpush.msra.mxu1 %v33_v52 }
  0x60   :  { %433 = vmatpush.msra.mxu0 %v267_v18  ;;  %465 = vmatpush.msra.mxu1 %v32_v53 }
  0x62   :  { %466 = vmatpush.msra.mxu1 %v31_v54 }
  0x64   :  { %467 = vmatpush.msra.mxu1 %v30_v56 }
  0x9e   :  { %v144_v23 = vpop.f32.mrf.mxu0 }
  0x9f   :  { %v145_v24 = vadd.f32 %v144_v23, %v121_v19 }
  0xa0   :  { %v167_v26 = vpop.f32.mrf.mxu1 }
  0xa1   :  { %v196_v27 = vmax.f32 %v145_v24, 0.0  ;;  %v168_v28 = vadd.f32 %v167_v26, %v122_v20 }
  0xa3   :  { %319 = vmatmul.f32.vlgmr.msra.gmra.mxu3 %v196_v27  ;;  %388 = vmatmul.f32.vlgmr.msrb.gmra.mxu2 %v196_v27  ;;  %v197_v31 = vmax.f32 %v168_v28, 0.0 }
  0xa4   :  { %v190_v33 = vpop.f32.mrf.mxu2  ;;  %544 = vmatpush.msrb.mxu2 %v61_v32 }
  0xa5   :  { %342 = vmatmul.f32.vlgmr.msrb.gmra.mxu0 %v197_v31  ;;  %v191_v36 = vadd.f32 %v190_v33, %v123_v30  ;;  %v60_v33 = vld [vmem:[%s1240_s3 + $0xf0] sm:$0xff] }
  0xa6   :  { %v147_v35 = vpop.f32.mrf.mxu0  ;;  %545 = vmatpush.msrb.mxu2 %v60_v33 }
  0xa7   :  { %v148_v37 = vadd.f32 %v147_v35, %v121_v19  ;;  %v198_v38 = vmax.f32 %v191_v36, 0.0  ;;  %v59_v35 = vld [vmem:[%s1240_s3 + $0xe8] sm:$0xff]  ;;  %v58_v36 = vld [vmem:[%s1240_s3 + $0xe0] sm:$0xff] }
  0xa8   :  { %v170_v39 = vpop.f32.mrf.mxu1  ;;  %546 = vmatpush.msrb.mxu2 %v59_v35 }
  0xa9   :  { %v199_v40 = vmax.f32 %v148_v37, 0.0  ;;  %v171_v41 = vadd.f32 %v170_v39, %v122_v20  ;;  %365 = vmatmul.f32.vlgmr.msrb.gmra.mxu1 %v198_v38  ;;  %v57_v37 = vld [vmem:[%s1240_s3 + $0xd8] sm:$0xff]  ;;  %v55_v39 = vld [vmem:[%s1240_s3 + $0xc8] sm:$0xff] }
  0xaa   :  { %547 = vmatpush.msrb.mxu2 %v58_v36 }
  0xab   :  { %322 = vmatmul.f32.gmra.mxu3 %v199_v40  ;;  %391 = vmatmul.f32.gmra.mxu2 %v199_v40  ;;  %v200_v43 = vmax.f32 %v171_v41, 0.0  ;;  %v54_v40 = vld [vmem:[%s1240_s3 + $0xc0] sm:$0xff]  ;;  %v22_v41 = vld [vmem:[%s1238_s0 + $0x8] sm:$0xff] }
  0xac   :  { %v193_v45 = vpop.f32.mrf.mxu2  ;;  %548 = vmatpush.msrb.mxu2 %v57_v37 }
  0xad   :  { %345 = vmatmul.f32.gmra.mxu0 %v200_v43  ;;  %v194_v47 = vadd.f32 %v193_v45, %v123_v30  ;;  %v69_v45 = vld [vmem:[%s1240_s3 + $0x138] sm:$0xff] }
  0xaf   :  { %v201_v48 = vmax.f32 %v194_v47, 0.0  ;;  %v67_v47 = vld [vmem:[%s1240_s3 + $0x128] sm:$0xff] }
  0xb1   :  { %368 = vmatmul.f32.gmra.mxu1 %v201_v48 }
  0xb3   :  { %411 = vmatmul.f32.vlgmr.msrb.gmra.mxu3 %v197_v31  ;;  %v63_v31 = vld [vmem:[%s1240_s3 + $0x108] sm:$0xff] }
  0xb4   :  { %521 = vmatpush.msra.mxu3 %v63_v31 }
  0xb5   :  { %434 = vmatmul.f32.vlgmr.msra.gmra.mxu0 %v198_v38  ;;  %v56_v38 = vld [vmem:[%s1240_s3 + $0xd0] sm:$0xff] }
  0xb6   :  { %522 = vmatpush.msra.mxu3 %v62_v34  ;;  %549 = vmatpush.msrb.mxu2 %v56_v38 }
  0xb8   :  { %550 = vmatpush.msrb.mxu2 %v55_v39 }
  0xba   :  { %551 = vmatpush.msrb.mxu2 %v54_v40 }
  0xbb   :  { %414 = vmatmul.f32.gmra.mxu3 %v200_v43  ;;  %v71_v43 = vld [vmem:[%s1240_s3 + $0x148] sm:$0xff] }
  0xbc   :  { %577 = vmatpush.msrb.mxu3 %v71_v43 }
  0xbd   :  { %437 = vmatmul.f32.gmra.mxu0 %v201_v48 }
  0xbe   :  { %578 = vmatpush.msrb.mxu3 %v70_v44 }
  0xc0   :  { %579 = vmatpush.msrb.mxu3 %v69_v45 }
  0xc2   :  { %580 = vmatpush.msrb.mxu3 %v68_v46 }
  0xc3   :  { %601 = vmatmul.msk.f32.vlgmr.msra.gmra.mxu3 %vm500_vm1, %v22_v41 }
  0xc4   :  { %581 = vmatpush.msrb.mxu3 %v67_v47 }
  0xc6   :  { %582 = vmatpush.msrb.mxu3 %v66_v59 }
  0xc8   :  { %583 = vmatpush.msrb.mxu3 %v65_v60 }
  0xca   :  { %584 = vmatpush.msrb.mxu3 %v64_v61 }
  0xcb   :  { %602 = vmatmul.msk.f32.gmra.mxu3 %vm500_vm1, %v23_v42 }
 0x122   :  { %v343_v1 = vpop.f32.mrf.mxu0 }
 0x126   :  { %v320_v3 = vpop.f32.mrf.mxu3  ;;  %v366_v5 = vpop.f32.mrf.mxu1 }
 0x127   :  { %v321_v4 = vadd.f32 %v320_v3, %v299_v2  ;;  %v389_v12 = vpop.f32.mrf.mxu2 }
 0x128   :  { %v390_v18 = vadd.f32 %v389_v12, %v300_v14 }
 0x129   :  { %v344_v6 = vadd.f32 %v343_v1, %v321_v4 }
 0x12a   :  { %v346_v7 = vpop.f32.mrf.mxu0 }
 0x12b   :  { %v367_v8 = vadd.f32 %v366_v5, %v344_v6 }
 0x12d   :  { %v441_v9 = vmax.f32 %v367_v8, 0.0 }
 0x12e   :  { %v323_v10 = vpop.f32.mrf.mxu3  ;;  %v369_v13 = vpop.f32.mrf.mxu1 }
 0x12f   :  { %v324_v11 = vadd.f32 %v323_v10, %v299_v2  ;;  %468 = vmatmul.f32.vlgmr.msra.gmra.mxu1 %v441_v9  ;;  %v392_v23 = vpop.f32.mrf.mxu2  ;;  %v29_v9 = vld [vmem:[%s1239_s4 + $0x4] ss:$0 sm:$0xff] }
 0x130   :  { %v393_v25 = vadd.f32 %v392_v23, %v300_v14 }
 0x131   :  { %v347_v15 = vadd.f32 %v346_v7, %v324_v11 }
 0x132   :  { %v435_v17 = vpop.f32.mrf.mxu0 }
 0x133   :  { %v370_v16 = vadd.f32 %v369_v13, %v347_v15 }
 0x135   :  { %v443_v19 = vmax.f32 %v370_v16, 0.0 }
 0x136   :  { %v412_v20 = vpop.f32.mrf.mxu3 }
 0x137   :  { %v413_v21 = vadd.f32 %v412_v20, %v390_v18  ;;  %471 = vmatmul.f32.gmra.mxu1 %v443_v19 }
 0x139   :  { %v436_v22 = vadd.f32 %v435_v17, %v413_v21 }
 0x13a   :  { %v438_v27 = vpop.f32.mrf.mxu0 }
 0x13b   :  { %v442_v24 = vmax.f32 %v436_v22, 0.0 }
 0x13d   :  { %599 = vmatmul.msk.f32.vlgmr.msra.gmra.mxu2 %vm445_vm0, %v442_v24 }
 0x13e   :  { %v415_v26 = vpop.f32.mrf.mxu3 }
 0x13f   :  { %v416_v28 = vadd.f32 %v415_v26, %v393_v25 }
 0x141   :  { %v439_v29 = vadd.f32 %v438_v27, %v416_v28 }
 0x143   :  { %v444_v30 = vmax.f32 %v439_v29, 0.0 }
 0x145   :  { %600 = vmatmul.msk.f32.gmra.mxu2 %vm445_vm0, %v444_v30 }
 0x146   :  { %v524_v62 = vpop.f32.mrf.mxu3 }
 0x14e   :  { %v527_v4 = vpop.f32.mrf.mxu3 }
 0x1ac   :  { %v469_v48 = vpop.f32.mrf.mxu1 }
 0x1ad   :  { %v470_v50 = vadd.f32 %v469_v48, %v27_v49 }
 0x1b4   :  { %v472_v54 = vpop.f32.mrf.mxu1 }
 0x1b5   :  { %v473_v55 = vadd.f32 %v472_v54, %v27_v49 }
 0x1c0   :  { %v492_v51 = vpop.f32.mrf.mxu2 }
 0x1c1   :  { %v493_v52 = vadd.f32 %v492_v51, %v470_v50 }
 0x1c3   :  { %v498_v53 = vmax.f32 %v493_v52, 0.0 }
 0x1c5   :  { %603 = vmatmul.msk.f32.vlgmr.msrb.gmra.mxu2 %vm445_vm0, %v498_v53 }
 0x1c8   :  { %v495_v56 = vpop.f32.mrf.mxu2 }
 0x1c9   :  { %v496_v57 = vadd.f32 %v495_v56, %v473_v55 }
 0x1cb   :  { %v499_v58 = vmax.f32 %v496_v57, 0.0 }
 0x1cd   :  { %604 = vmatmul.msk.f32.gmra.mxu2 %vm445_vm0, %v499_v58 }
 0x248   :  { %v553_v0 = vpop.f32.mrf.mxu2 }
 0x249   :  { %v554_v1 = vadd.f32 %v553_v0, %v524_v62 }
 0x24b   :  { %v559_v2 = vadd.f32 %v554_v1, %v28_v63 }
 0x24d   :  { %v561_v3 = vmax.f32 %v559_v2, 0.0 }
 0x24f   :  { %605 = vmatmul.msk.f32.vlgmr.msrb.gmra.mxu3 %vm445_vm0, %v561_v3 }
 0x250   :  { %v556_v5 = vpop.f32.mrf.mxu2 }
 0x251   :  { %v557_v6 = vadd.f32 %v556_v5, %v527_v4 }
 0x253   :  { %v560_v7 = vadd.f32 %v557_v6, %v28_v63 }
 0x255   :  { %v562_v8 = vmax.f32 %v560_v7, 0.0 }
 0x257   :  { %606 = vmatmul.msk.f32.gmra.mxu3 %vm445_vm0, %v562_v8 }
 0x2d2   :  { %v586_v10 = vpop.f32.mrf.mxu3 }
 0x2d3   :  { %v587_v11 = vadd.f32 %v586_v10, %v29_v9 }
 0x2d5   :  { %592 = vst.msk [vmem:[%s1241_s5] sm:$0xff] %vm445_vm0, %v587_v11 }
 0x2da   :  { %v589_v12 = vpop.f32.mrf.mxu3 }
 0x2db   :  { %v590_v13 = vadd.f32 %v589_v12, %v29_v9 }
 0x2dd   :  { %593 = vst.msk [vmem:[%s1241_s5 + $0x8] sm:$0xff] %vm445_vm0, %v590_v13 }

</bundles_post_ra>
